<compile_context>
chip_gen: v5e
topology: v5e:2x2
jax: 0.10.0
libtpu: 0.0.40
codegen_flags: <defaults>
</compile_context>

<pallas_src>
import math
import functools

import jax
import jax.numpy as jnp
from jax.experimental import pallas as pl
from jax.experimental.pallas import tpu as pltpu


# ----------------------------- Pallas kernel --------------------------------

def mha_kernel(x_ref, c_ref, wq_ref, wkv_ref, wo_ref,
               ropeq_ref, ropekv_ref, bo_ref, o_ref, *, n_heads):
    # x_ref: (1, C, Tt) f32   c_ref: (1, C, Ts) f32   (native NCW layout)
    # wq_ref: (2C, C) bf16    wkv_ref: (3C, C) bf16   wo_ref: (C, Co) bf16
    # ropeq_ref: (3, C, Tt) f32 = [cos; sin; rotated q-bias] * 1/sqrt(kc)
    # ropekv_ref: (3, C, Ts) f32 = [cos; sin; rotated k-bias]
    # bo_ref: (Co, 1) f32 = (conv_o bias + bv @ wo)^T
    C = x_ref.shape[1]
    tt = x_ref.shape[2]
    ts = c_ref.shape[2]
    kc = C // n_heads

    xb = x_ref[0].astype(jnp.bfloat16)             # (C, tt)
    cb = c_ref[0].astype(jnp.bfloat16)             # (C, ts)

    # Fused 1x1-conv projections (bf16 MXU operands, f32 accumulate), rotate-half
    # already folded into the weights: rows [0:C] = plain proj, [C:2C] = rotated proj.
    q0 = jnp.dot(wq_ref[...], xb, preferred_element_type=jnp.float32)    # (2C, tt)
    kv0 = jnp.dot(wkv_ref[...], cb, preferred_element_type=jnp.float32)  # (3C, ts)

    cos_q, sin_q, add_q = ropeq_ref[0], ropeq_ref[1], ropeq_ref[2]       # (C, tt)
    cos_k, sin_k, add_k = ropekv_ref[0], ropekv_ref[1], ropekv_ref[2]    # (C, ts)

    # Rotary = full-width VPU FMAs; 1/sqrt(kc) and conv biases folded into the tables.
    q = (q0[:C] * cos_q + q0[C:2 * C] * sin_q + add_q).astype(jnp.bfloat16)   # (C, tt)
    k = (kv0[:C] * cos_k + kv0[C:2 * C] * sin_k + add_k).astype(jnp.bfloat16)  # (C, ts)
    v = kv0[2 * C:3 * C].astype(jnp.bfloat16)                                  # (C, ts)

    wo = wo_ref[...]                               # (C, Co) bf16
    acc = None
    for h in range(n_heads):                       # n_heads is a small static constant
        lo = h * kc                                # sublane-aligned head slices
        qh = q[lo:lo + kc]                         # (kc, tt)
        kh = k[lo:lo + kc]                         # (kc, ts)
        vh = v[lo:lo + kc]                         # (kc, ts)

        # scores = q_h^T k_h  (contract the channel/sublane axis), f32 accumulate.
        s = jax.lax.dot_general(qh, kh, (((0,), (0,)), ((), ())),
                                preferred_element_type=jnp.float32)        # (tt, ts)
        m = jnp.max(s, axis=-1, keepdims=True)
        e = jnp.exp(s - m)
        p = (e * pl.reciprocal(jnp.sum(e, axis=-1, keepdims=True),
                               approx=True)).astype(jnp.bfloat16)          # (tt, ts)

        # O_h^T = v_h P_h^T
        oh = jax.lax.dot_general(vh, p, (((1,), (1,)), ((), ())),
                                 preferred_element_type=jnp.float32
                                 ).astype(jnp.bfloat16)                    # (kc, tt)
        # out^T += wo_h^T O_h^T
        part = jax.lax.dot_general(wo[lo:lo + kc], oh, (((0,), (0,)), ((), ())),
                                   preferred_element_type=jnp.float32)     # (Co, tt)
        acc = part if acc is None else acc + part

    o_ref[0] = acc + bo_ref[...]                   # (Co, tt), output already in NCW


# ------------------------------ wrapper --------------------------------------

def rotary_freqs(seq_len, dim, theta=10000.0):
    inv_freq = 1.0 / (theta ** (jnp.arange(0, dim, 2, dtype=jnp.float32) / dim))
    t = jnp.arange(seq_len, dtype=jnp.float32)
    freqs = jnp.einsum('i,j->ij', t, inv_freq)          # (T, dim//2)
    return jnp.concatenate([freqs, freqs], axis=-1)     # (T, dim)


def _rotate_half_matrix(kc):
    """R such that x @ R == rotate_half(x) for a length-kc vector."""
    half = kc // 2
    r = jnp.zeros((kc, kc), jnp.float32)
    r = r.at[half:, :half].set(-jnp.eye(half, dtype=jnp.float32))
    r = r.at[:half, half:].set(jnp.eye(half, dtype=jnp.float32))
    return r


def multi_head_attention(x_bct, c_bct, params, n_heads):
    """x_bct: (B, C, T_t), c_bct: (B, C, T_s) — PyTorch NCW layout (consumed as-is)."""
    B, C, Tt = x_bct.shape
    _, _, Ts = c_bct.shape
    Co = params['wo'].shape[1]
    kc = C // n_heads
    scale = 1.0 / math.sqrt(kc)

    # ---- host-side precompute / weight folding (done once, outside the kernel) ----
    rfull = jnp.kron(jnp.eye(n_heads, dtype=jnp.float32), _rotate_half_matrix(kc))  # (C, C)

    fq, fk = rotary_freqs(Tt, kc), rotary_freqs(Ts, kc)
    cos_q = jnp.tile(jnp.cos(fq), (1, n_heads))   # (Tt, C)
    sin_q = jnp.tile(jnp.sin(fq), (1, n_heads))
    cos_k = jnp.tile(jnp.cos(fk), (1, n_heads))   # (Ts, C)
    sin_k = jnp.tile(jnp.sin(fk), (1, n_heads))

    bq, bk, bv, bo = params['bq'], params['bk'], params['bv'], params['bo']
    wq, wk, wv, wo = params['wq'], params['wk'], params['wv'], params['wo']

    add_q = bq * cos_q + (bq @ rfull) * sin_q            # rotated q bias, (Tt, C)
    add_k = bk * cos_k + (bk @ rfull) * sin_k            # rotated k bias, (Ts, C)

    # (3, C, T) tables, 1/sqrt(kc) folded into the q side.
    rope_q = jnp.transpose(jnp.stack([cos_q, sin_q, add_q], axis=0) * scale, (0, 2, 1))
    rope_k = jnp.transpose(jnp.stack([cos_k, sin_k, add_k], axis=0), (0, 2, 1))

    # rotate-half folded into the projection weights (transposed for NCW contraction).
    wqT_ext = jnp.concatenate([wq.T, (wq @ rfull).T], axis=0).astype(jnp.bfloat16)   # (2C, C)
    wkvT_ext = jnp.concatenate([wk.T, (wk @ rfull).T, wv.T],
                               axis=0).astype(jnp.bfloat16)                          # (3C, C)
    wo_b = wo.astype(jnp.bfloat16)                                                   # (C, Co)
    bo_eff = (bo + bv @ wo).T.astype(jnp.float32)        # v bias folded through softmax, (Co, 1)

    kernel = functools.partial(mha_kernel, n_heads=n_heads)
    const2d = lambda shape: pl.BlockSpec(shape, lambda b: (0, 0))
    const3d = lambda shape: pl.BlockSpec(shape, lambda b: (0, 0, 0))

    out = pl.pallas_call(
        kernel,
        out_shape=jax.ShapeDtypeStruct((B, Co, Tt), jnp.float32),
        grid_spec=pltpu.PrefetchScalarGridSpec(
            num_scalar_prefetch=0,
            grid=(B,),
            in_specs=[
                pl.BlockSpec((1, C, Tt), lambda b: (b, 0, 0)),   # x (NCW)
                pl.BlockSpec((1, C, Ts), lambda b: (b, 0, 0)),   # c (NCW)
                const2d((2 * C, C)),       # [wq | wq@R]^T
                const2d((3 * C, C)),       # [wk | wk@R | wv]^T
                const2d((C, Co)),          # wo
                const3d((3, C, Tt)),       # rope_q  [cos; sin; bias] * scale
                const3d((3, C, Ts)),       # rope_k  [cos; sin; bias]
                const2d((Co, 1)),          # bo_eff^T
            ],
            out_specs=pl.BlockSpec((1, Co, Tt), lambda b: (b, 0, 0)),
        ),
        compiler_params=pltpu.CompilerParams(
            dimension_semantics=("parallel",),
            vmem_limit_bytes=32 * 1024 * 1024),
    )(x_bct.astype(jnp.float32), c_bct.astype(jnp.float32),
      wqT_ext, wkvT_ext, wo_b, rope_q, rope_k, bo_eff)

    return out   # already PyTorch NCW layout: (B, out_channels, T_t)


# --------------------------- pure-JAX reference -------------------------------

def reference_forward(x_bct, c_bct, params, n_heads):
    B, C, Tt = x_bct.shape
    _, _, Ts = c_bct.shape
    kc = C // n_heads
    x = jnp.transpose(x_bct, (0, 2, 1))
    c = jnp.transpose(c_bct, (0, 2, 1))

    q = x @ params['wq'] + params['bq']
    k = c @ params['wk'] + params['bk']
    v = c @ params['wv'] + params['bv']

    def split(t):  # (B, T, C) -> (B, H, T, kc), head-major channel split
        return t.reshape(t.shape[0], t.shape[1], n_heads, kc).transpose(0, 2, 1, 3)

    qh, kh, vh = split(q), split(k), split(v)

    def rot_half(t):
        t1, t2 = jnp.split(t, 2, axis=-1)
        return jnp.concatenate([-t2, t1], axis=-1)

    fq = rotary_freqs(Tt, kc)
    fk = rotary_freqs(Ts, kc)
    qh = qh * jnp.cos(fq) + rot_half(qh) * jnp.sin(fq)
    kh = kh * jnp.cos(fk) + rot_half(kh) * jnp.sin(fk)

    scores = jnp.einsum('bhtc,bhsc->bhts', qh, kh) / math.sqrt(kc)
    p = jax.nn.softmax(scores, axis=-1)
    out = jnp.einsum('bhts,bhsc->bhtc', p, vh)
    out = out.transpose(0, 2, 1, 3).reshape(B, Tt, C)
    out = out @ params['wo'] + params['bo']
    return jnp.transpose(out, (0, 2, 1))


# --------------------------------- main ---------------------------------------

def make_params(key, channels, out_channels):
    """Deterministic parameter init (xavier-uniform style), matmul layout (C_in, C_out)."""
    def xavier(k, fan_in, fan_out):
        limit = math.sqrt(6.0 / (fan_in + fan_out))
        return jax.random.uniform(k, (fan_in, fan_out), jnp.float32, -limit, limit)

    def bias(k, fan_in, n):
        limit = 1.0 / math.sqrt(fan_in)
        return jax.random.uniform(k, (1, n), jnp.float32, -limit, limit)

    ks = jax.random.split(key, 8)
    return {
        'wq': xavier(ks[0], channels, channels), 'bq': bias(ks[1], channels, channels),
        'wk': xavier(ks[2], channels, channels), 'bk': bias(ks[3], channels, channels),
        'wv': xavier(ks[4], channels, channels), 'bv': bias(ks[5], channels, channels),
        'wo': xavier(ks[6], channels, out_channels), 'bo': bias(ks[7], channels, out_channels),
    }


if __name__ == "__main__":
    B = 2
    channels = 64
    out_channels = 32
    n_heads = 4
    T_t = 16   # query length
    T_s = 24   # key/value length (cross-attention)

    key = jax.random.PRNGKey(0)
    kx, kc_, kp = jax.random.split(key, 3)
    x = jax.random.normal(kx, (B, channels, T_t), jnp.float32)   # PyTorch NCW
    c = jax.random.normal(kc_, (B, channels, T_s), jnp.float32)

    params = make_params(kp, channels, out_channels)

    y = multi_head_attention(x, c, params, n_heads)
    y = jax.block_until_ready(y)

    y_ref = reference_forward(x, c, params, n_heads)
    assert y.shape == (B, out_channels, T_t), y.shape
    # bf16 MXU operands on every matmul + approx softmax reciprocal -> compare loosely
    # against the f32 reference (intentional trade for MXU throughput).
    assert jnp.allclose(y, y_ref, atol=5e-2, rtol=5e-2), float(jnp.max(jnp.abs(y - y_ref)))

    print("KERNEL_OK")
</pallas_src>

<mosaic_0001>
module attributes {stable_mosaic.version = 11 : i64} {
  func.func @mha_kernel(%arg0: i32, %arg1: memref<1x64x16xf32, #tpu.memory_space<vmem>>, %arg2: memref<1x64x24xf32, #tpu.memory_space<vmem>>, %arg3: memref<128x64xbf16, #tpu.memory_space<vmem>>, %arg4: memref<192x64xbf16, #tpu.memory_space<vmem>>, %arg5: memref<64x32xbf16, #tpu.memory_space<vmem>>, %arg6: memref<3x64x16xf32, #tpu.memory_space<vmem>>, %arg7: memref<3x64x24xf32, #tpu.memory_space<vmem>>, %arg8: memref<32x1xf32, #tpu.memory_space<vmem>>, %arg9: memref<1x32x16xf32, #tpu.memory_space<vmem>>) attributes {dimension_semantics = [#tpu.dimension_semantics<parallel>], iteration_bounds = array<i64: 2>, scalar_prefetch = 0 : i64, scratch_operands = 0 : i64, tpu.core_type = #tpu.core_type<tc>, window_params = [{transform_indices = @transform_0, window_bounds = array<i64: 1, 64, 16>}, {transform_indices = @transform_1, window_bounds = array<i64: 1, 64, 24>}, {pipeline_mode = #tpu.pipeline_mode<synchronous>, transform_indices = @transform_2, window_bounds = array<i64: 128, 64>}, {pipeline_mode = #tpu.pipeline_mode<synchronous>, transform_indices = @transform_3, window_bounds = array<i64: 192, 64>}, {pipeline_mode = #tpu.pipeline_mode<synchronous>, transform_indices = @transform_4, window_bounds = array<i64: 64, 32>}, {pipeline_mode = #tpu.pipeline_mode<synchronous>, transform_indices = @transform_5, window_bounds = array<i64: 3, 64, 16>}, {pipeline_mode = #tpu.pipeline_mode<synchronous>, transform_indices = @transform_6, window_bounds = array<i64: 3, 64, 24>}, {pipeline_mode = #tpu.pipeline_mode<synchronous>, transform_indices = @transform_7, window_bounds = array<i64: 32, 1>}, {transform_indices = @transform_8, window_bounds = array<i64: 1, 32, 16>}]} {
    %c0 = arith.constant 0 : index
    %c0_0 = arith.constant 0 : index
    %c0_1 = arith.constant 0 : index
    %0 = vector.load %arg1[%c0, %c0_0, %c0_1] : memref<1x64x16xf32, #tpu.memory_space<vmem>>, vector<1x64x16xf32>
    %1 = vector.shape_cast %0 : vector<1x64x16xf32> to vector<64x16xf32>
    %2 = arith.truncf %1 : vector<64x16xf32> to vector<64x16xbf16>
    %c0_2 = arith.constant 0 : index
    %c0_3 = arith.constant 0 : index
    %c0_4 = arith.constant 0 : index
    %3 = vector.load %arg2[%c0_2, %c0_3, %c0_4] : memref<1x64x24xf32, #tpu.memory_space<vmem>>, vector<1x64x24xf32>
    %4 = vector.shape_cast %3 : vector<1x64x24xf32> to vector<64x24xf32>
    %5 = arith.truncf %4 : vector<64x24xf32> to vector<64x24xbf16>
    %c0_5 = arith.constant 0 : index
    %c0_6 = arith.constant 0 : index
    %6 = vector.load %arg3[%c0_5, %c0_6] : memref<128x64xbf16, #tpu.memory_space<vmem>>, vector<128x64xbf16>
    %cst = arith.constant dense<0.000000e+00> : vector<128x16xf32>
    %7 = tpu.matmul %6, %2, %cst {dimension_numbers = #tpu.dot_dimension_numbers<[1], [0], [0], [1], [0, 0, 1, 1], [], []>} : vector<128x64xbf16>, vector<64x16xbf16>, vector<128x16xf32> -> vector<128x16xf32>
    %c0_7 = arith.constant 0 : index
    %c0_8 = arith.constant 0 : index
    %8 = vector.load %arg4[%c0_7, %c0_8] : memref<192x64xbf16, #tpu.memory_space<vmem>>, vector<192x64xbf16>
    %cst_9 = arith.constant dense<0.000000e+00> : vector<192x24xf32>
    %9 = tpu.matmul %8, %5, %cst_9 {dimension_numbers = #tpu.dot_dimension_numbers<[1], [0], [0], [1], [0, 0, 1, 1], [], []>} : vector<192x64xbf16>, vector<64x24xbf16>, vector<192x24xf32> -> vector<192x24xf32>
    %c0_10 = arith.constant 0 : index
    %c0_11 = arith.constant 0 : index
    %c0_12 = arith.constant 0 : index
    %10 = vector.load %arg6[%c0_10, %c0_11, %c0_12] : memref<3x64x16xf32, #tpu.memory_space<vmem>>, vector<1x64x16xf32>
    %11 = vector.shape_cast %10 : vector<1x64x16xf32> to vector<64x16xf32>
    %c1 = arith.constant 1 : index
    %c0_13 = arith.constant 0 : index
    %c0_14 = arith.constant 0 : index
    %12 = vector.load %arg6[%c1, %c0_13, %c0_14] : memref<3x64x16xf32, #tpu.memory_space<vmem>>, vector<1x64x16xf32>
    %13 = vector.shape_cast %12 : vector<1x64x16xf32> to vector<64x16xf32>
    %c2 = arith.constant 2 : index
    %c0_15 = arith.constant 0 : index
    %c0_16 = arith.constant 0 : index
    %14 = vector.load %arg6[%c2, %c0_15, %c0_16] : memref<3x64x16xf32, #tpu.memory_space<vmem>>, vector<1x64x16xf32>
    %15 = vector.shape_cast %14 : vector<1x64x16xf32> to vector<64x16xf32>
    %c0_17 = arith.constant 0 : index
    %c0_18 = arith.constant 0 : index
    %c0_19 = arith.constant 0 : index
    %16 = vector.load %arg7[%c0_17, %c0_18, %c0_19] : memref<3x64x24xf32, #tpu.memory_space<vmem>>, vector<1x64x24xf32>
    %17 = vector.shape_cast %16 : vector<1x64x24xf32> to vector<64x24xf32>
    %c1_20 = arith.constant 1 : index
    %c0_21 = arith.constant 0 : index
    %c0_22 = arith.constant 0 : index
    %18 = vector.load %arg7[%c1_20, %c0_21, %c0_22] : memref<3x64x24xf32, #tpu.memory_space<vmem>>, vector<1x64x24xf32>
    %19 = vector.shape_cast %18 : vector<1x64x24xf32> to vector<64x24xf32>
    %c2_23 = arith.constant 2 : index
    %c0_24 = arith.constant 0 : index
    %c0_25 = arith.constant 0 : index
    %20 = vector.load %arg7[%c2_23, %c0_24, %c0_25] : memref<3x64x24xf32, #tpu.memory_space<vmem>>, vector<1x64x24xf32>
    %21 = vector.shape_cast %20 : vector<1x64x24xf32> to vector<64x24xf32>
    %22 = vector.extract_strided_slice %7 {offsets = [0, 0], sizes = [64, 16], strides = [1, 1]} : vector<128x16xf32> to vector<64x16xf32>
    %23 = arith.mulf %22, %11 : vector<64x16xf32>
    %24 = vector.extract_strided_slice %7 {offsets = [64, 0], sizes = [64, 16], strides = [1, 1]} : vector<128x16xf32> to vector<64x16xf32>
    %25 = arith.mulf %24, %13 : vector<64x16xf32>
    %26 = arith.addf %23, %25 : vector<64x16xf32>
    %27 = arith.addf %26, %15 : vector<64x16xf32>
    %28 = arith.truncf %27 : vector<64x16xf32> to vector<64x16xbf16>
    %29 = vector.extract_strided_slice %9 {offsets = [0, 0], sizes = [64, 24], strides = [1, 1]} : vector<192x24xf32> to vector<64x24xf32>
    %30 = arith.mulf %29, %17 : vector<64x24xf32>
    %31 = vector.extract_strided_slice %9 {offsets = [64, 0], sizes = [64, 24], strides = [1, 1]} : vector<192x24xf32> to vector<64x24xf32>
    %32 = arith.mulf %31, %19 : vector<64x24xf32>
    %33 = arith.addf %30, %32 : vector<64x24xf32>
    %34 = arith.addf %33, %21 : vector<64x24xf32>
    %35 = arith.truncf %34 : vector<64x24xf32> to vector<64x24xbf16>
    %36 = vector.extract_strided_slice %9 {offsets = [128, 0], sizes = [64, 24], strides = [1, 1]} : vector<192x24xf32> to vector<64x24xf32>
    %37 = arith.truncf %36 : vector<64x24xf32> to vector<64x24xbf16>
    %c0_26 = arith.constant 0 : index
    %c0_27 = arith.constant 0 : index
    %38 = vector.load %arg5[%c0_26, %c0_27] : memref<64x32xbf16, #tpu.memory_space<vmem>>, vector<64x32xbf16>
    %39 = vector.extract_strided_slice %28 {offsets = [0, 0], sizes = [16, 16], strides = [1, 1]} : vector<64x16xbf16> to vector<16x16xbf16>
    %40 = vector.extract_strided_slice %35 {offsets = [0, 0], sizes = [16, 24], strides = [1, 1]} : vector<64x24xbf16> to vector<16x24xbf16>
    %41 = vector.extract_strided_slice %37 {offsets = [0, 0], sizes = [16, 24], strides = [1, 1]} : vector<64x24xbf16> to vector<16x24xbf16>
    %cst_28 = arith.constant dense<0.000000e+00> : vector<16x24xf32>
    %42 = tpu.matmul %39, %40, %cst_28 {dimension_numbers = #tpu.dot_dimension_numbers<[0], [0], [1], [1], [0, 1, 1, 1], [], []>} : vector<16x16xbf16>, vector<16x24xbf16>, vector<16x24xf32> -> vector<16x24xf32>
    %cst_29 = arith.constant dense<0xFF800000> : vector<16xf32>
    %43 = vector.multi_reduction <maximumf>, %42, %cst_29 [1] : vector<16x24xf32> to vector<16xf32>
    %44 = vector.shape_cast %43 : vector<16xf32> to vector<16x1xf32>
    %45 = vector.broadcast %44 : vector<16x1xf32> to vector<16x24xf32>
    %46 = arith.subf %42, %45 : vector<16x24xf32>
    %47 = math.exp %46 : vector<16x24xf32>
    %cst_30 = arith.constant dense<0.000000e+00> : vector<16xf32>
    %48 = vector.multi_reduction <add>, %47, %cst_30 [1] : vector<16x24xf32> to vector<16xf32>
    %49 = vector.shape_cast %48 : vector<16xf32> to vector<16x1xf32>
    %50 = tpu.reciprocal %49 {approx = true} : vector<16x1xf32> -> vector<16x1xf32>
    %51 = vector.broadcast %50 : vector<16x1xf32> to vector<16x24xf32>
    %52 = arith.mulf %47, %51 : vector<16x24xf32>
    %53 = arith.truncf %52 : vector<16x24xf32> to vector<16x24xbf16>
    %cst_31 = arith.constant dense<0.000000e+00> : vector<16x16xf32>
    %54 = tpu.matmul %41, %53, %cst_31 {dimension_numbers = #tpu.dot_dimension_numbers<[1], [1], [0], [0], [0, 0, 1, 0], [], []>} : vector<16x24xbf16>, vector<16x24xbf16>, vector<16x16xf32> -> vector<16x16xf32>
    %55 = arith.truncf %54 : vector<16x16xf32> to vector<16x16xbf16>
    %56 = vector.extract_strided_slice %38 {offsets = [0, 0], sizes = [16, 32], strides = [1, 1]} : vector<64x32xbf16> to vector<16x32xbf16>
    %cst_32 = arith.constant dense<0.000000e+00> : vector<32x16xf32>
    %57 = tpu.matmul %56, %55, %cst_32 {dimension_numbers = #tpu.dot_dimension_numbers<[0], [0], [1], [1], [0, 1, 1, 1], [], []>} : vector<16x32xbf16>, vector<16x16xbf16>, vector<32x16xf32> -> vector<32x16xf32>
    %58 = vector.extract_strided_slice %28 {offsets = [16, 0], sizes = [16, 16], strides = [1, 1]} : vector<64x16xbf16> to vector<16x16xbf16>
    %59 = vector.extract_strided_slice %35 {offsets = [16, 0], sizes = [16, 24], strides = [1, 1]} : vector<64x24xbf16> to vector<16x24xbf16>
    %60 = vector.extract_strided_slice %37 {offsets = [16, 0], sizes = [16, 24], strides = [1, 1]} : vector<64x24xbf16> to vector<16x24xbf16>
    %cst_33 = arith.constant dense<0.000000e+00> : vector<16x24xf32>
    %61 = tpu.matmul %58, %59, %cst_33 {dimension_numbers = #tpu.dot_dimension_numbers<[0], [0], [1], [1], [0, 1, 1, 1], [], []>} : vector<16x16xbf16>, vector<16x24xbf16>, vector<16x24xf32> -> vector<16x24xf32>
    %cst_34 = arith.constant dense<0xFF800000> : vector<16xf32>
    %62 = vector.multi_reduction <maximumf>, %61, %cst_34 [1] : vector<16x24xf32> to vector<16xf32>
    %63 = vector.shape_cast %62 : vector<16xf32> to vector<16x1xf32>
    %64 = vector.broadcast %63 : vector<16x1xf32> to vector<16x24xf32>
    %65 = arith.subf %61, %64 : vector<16x24xf32>
    %66 = math.exp %65 : vector<16x24xf32>
    %cst_35 = arith.constant dense<0.000000e+00> : vector<16xf32>
    %67 = vector.multi_reduction <add>, %66, %cst_35 [1] : vector<16x24xf32> to vector<16xf32>
    %68 = vector.shape_cast %67 : vector<16xf32> to vector<16x1xf32>
    %69 = tpu.reciprocal %68 {approx = true} : vector<16x1xf32> -> vector<16x1xf32>
    %70 = vector.broadcast %69 : vector<16x1xf32> to vector<16x24xf32>
    %71 = arith.mulf %66, %70 : vector<16x24xf32>
    %72 = arith.truncf %71 : vector<16x24xf32> to vector<16x24xbf16>
    %cst_36 = arith.constant dense<0.000000e+00> : vector<16x16xf32>
    %73 = tpu.matmul %60, %72, %cst_36 {dimension_numbers = #tpu.dot_dimension_numbers<[1], [1], [0], [0], [0, 0, 1, 0], [], []>} : vector<16x24xbf16>, vector<16x24xbf16>, vector<16x16xf32> -> vector<16x16xf32>
    %74 = arith.truncf %73 : vector<16x16xf32> to vector<16x16xbf16>
    %75 = vector.extract_strided_slice %38 {offsets = [16, 0], sizes = [16, 32], strides = [1, 1]} : vector<64x32xbf16> to vector<16x32xbf16>
    %cst_37 = arith.constant dense<0.000000e+00> : vector<32x16xf32>
    %76 = tpu.matmul %75, %74, %cst_37 {dimension_numbers = #tpu.dot_dimension_numbers<[0], [0], [1], [1], [0, 1, 1, 1], [], []>} : vector<16x32xbf16>, vector<16x16xbf16>, vector<32x16xf32> -> vector<32x16xf32>
    %77 = arith.addf %57, %76 : vector<32x16xf32>
    %78 = vector.extract_strided_slice %28 {offsets = [32, 0], sizes = [16, 16], strides = [1, 1]} : vector<64x16xbf16> to vector<16x16xbf16>
    %79 = vector.extract_strided_slice %35 {offsets = [32, 0], sizes = [16, 24], strides = [1, 1]} : vector<64x24xbf16> to vector<16x24xbf16>
    %80 = vector.extract_strided_slice %37 {offsets = [32, 0], sizes = [16, 24], strides = [1, 1]} : vector<64x24xbf16> to vector<16x24xbf16>
    %cst_38 = arith.constant dense<0.000000e+00> : vector<16x24xf32>
    %81 = tpu.matmul %78, %79, %cst_38 {dimension_numbers = #tpu.dot_dimension_numbers<[0], [0], [1], [1], [0, 1, 1, 1], [], []>} : vector<16x16xbf16>, vector<16x24xbf16>, vector<16x24xf32> -> vector<16x24xf32>
    %cst_39 = arith.constant dense<0xFF800000> : vector<16xf32>
    %82 = vector.multi_reduction <maximumf>, %81, %cst_39 [1] : vector<16x24xf32> to vector<16xf32>
    %83 = vector.shape_cast %82 : vector<16xf32> to vector<16x1xf32>
    %84 = vector.broadcast %83 : vector<16x1xf32> to vector<16x24xf32>
    %85 = arith.subf %81, %84 : vector<16x24xf32>
    %86 = math.exp %85 : vector<16x24xf32>
    %cst_40 = arith.constant dense<0.000000e+00> : vector<16xf32>
    %87 = vector.multi_reduction <add>, %86, %cst_40 [1] : vector<16x24xf32> to vector<16xf32>
    %88 = vector.shape_cast %87 : vector<16xf32> to vector<16x1xf32>
    %89 = tpu.reciprocal %88 {approx = true} : vector<16x1xf32> -> vector<16x1xf32>
    %90 = vector.broadcast %89 : vector<16x1xf32> to vector<16x24xf32>
    %91 = arith.mulf %86, %90 : vector<16x24xf32>
    %92 = arith.truncf %91 : vector<16x24xf32> to vector<16x24xbf16>
    %cst_41 = arith.constant dense<0.000000e+00> : vector<16x16xf32>
    %93 = tpu.matmul %80, %92, %cst_41 {dimension_numbers = #tpu.dot_dimension_numbers<[1], [1], [0], [0], [0, 0, 1, 0], [], []>} : vector<16x24xbf16>, vector<16x24xbf16>, vector<16x16xf32> -> vector<16x16xf32>
    %94 = arith.truncf %93 : vector<16x16xf32> to vector<16x16xbf16>
    %95 = vector.extract_strided_slice %38 {offsets = [32, 0], sizes = [16, 32], strides = [1, 1]} : vector<64x32xbf16> to vector<16x32xbf16>
    %cst_42 = arith.constant dense<0.000000e+00> : vector<32x16xf32>
    %96 = tpu.matmul %95, %94, %cst_42 {dimension_numbers = #tpu.dot_dimension_numbers<[0], [0], [1], [1], [0, 1, 1, 1], [], []>} : vector<16x32xbf16>, vector<16x16xbf16>, vector<32x16xf32> -> vector<32x16xf32>
    %97 = arith.addf %77, %96 : vector<32x16xf32>
    %98 = vector.extract_strided_slice %28 {offsets = [48, 0], sizes = [16, 16], strides = [1, 1]} : vector<64x16xbf16> to vector<16x16xbf16>
    %99 = vector.extract_strided_slice %35 {offsets = [48, 0], sizes = [16, 24], strides = [1, 1]} : vector<64x24xbf16> to vector<16x24xbf16>
    %100 = vector.extract_strided_slice %37 {offsets = [48, 0], sizes = [16, 24], strides = [1, 1]} : vector<64x24xbf16> to vector<16x24xbf16>
    %cst_43 = arith.constant dense<0.000000e+00> : vector<16x24xf32>
    %101 = tpu.matmul %98, %99, %cst_43 {dimension_numbers = #tpu.dot_dimension_numbers<[0], [0], [1], [1], [0, 1, 1, 1], [], []>} : vector<16x16xbf16>, vector<16x24xbf16>, vector<16x24xf32> -> vector<16x24xf32>
    %cst_44 = arith.constant dense<0xFF800000> : vector<16xf32>
    %102 = vector.multi_reduction <maximumf>, %101, %cst_44 [1] : vector<16x24xf32> to vector<16xf32>
    %103 = vector.shape_cast %102 : vector<16xf32> to vector<16x1xf32>
    %104 = vector.broadcast %103 : vector<16x1xf32> to vector<16x24xf32>
    %105 = arith.subf %101, %104 : vector<16x24xf32>
    %106 = math.exp %105 : vector<16x24xf32>
    %cst_45 = arith.constant dense<0.000000e+00> : vector<16xf32>
    %107 = vector.multi_reduction <add>, %106, %cst_45 [1] : vector<16x24xf32> to vector<16xf32>
    %108 = vector.shape_cast %107 : vector<16xf32> to vector<16x1xf32>
    %109 = tpu.reciprocal %108 {approx = true} : vector<16x1xf32> -> vector<16x1xf32>
    %110 = vector.broadcast %109 : vector<16x1xf32> to vector<16x24xf32>
    %111 = arith.mulf %106, %110 : vector<16x24xf32>
    %112 = arith.truncf %111 : vector<16x24xf32> to vector<16x24xbf16>
    %cst_46 = arith.constant dense<0.000000e+00> : vector<16x16xf32>
    %113 = tpu.matmul %100, %112, %cst_46 {dimension_numbers = #tpu.dot_dimension_numbers<[1], [1], [0], [0], [0, 0, 1, 0], [], []>} : vector<16x24xbf16>, vector<16x24xbf16>, vector<16x16xf32> -> vector<16x16xf32>
    %114 = arith.truncf %113 : vector<16x16xf32> to vector<16x16xbf16>
    %115 = vector.extract_strided_slice %38 {offsets = [48, 0], sizes = [16, 32], strides = [1, 1]} : vector<64x32xbf16> to vector<16x32xbf16>
    %cst_47 = arith.constant dense<0.000000e+00> : vector<32x16xf32>
    %116 = tpu.matmul %115, %114, %cst_47 {dimension_numbers = #tpu.dot_dimension_numbers<[0], [0], [1], [1], [0, 1, 1, 1], [], []>} : vector<16x32xbf16>, vector<16x16xbf16>, vector<32x16xf32> -> vector<32x16xf32>
    %117 = arith.addf %97, %116 : vector<32x16xf32>
    %c0_48 = arith.constant 0 : index
    %c0_49 = arith.constant 0 : index
    %118 = vector.load %arg8[%c0_48, %c0_49] : memref<32x1xf32, #tpu.memory_space<vmem>>, vector<32x1xf32>
    %119 = vector.broadcast %118 : vector<32x1xf32> to vector<32x16xf32>
    %120 = arith.addf %117, %119 : vector<32x16xf32>
    %c0_50 = arith.constant 0 : index
    %c0_51 = arith.constant 0 : index
    %c0_52 = arith.constant 0 : index
    %121 = vector.load %arg9[%c0_50, %c0_51, %c0_52] : memref<1x32x16xf32, #tpu.memory_space<vmem>>, vector<1x32x16xf32>
    %122 = vector.shape_cast %121 : vector<1x32x16xf32> to vector<32x16xf32>
    %123 = vector.shape_cast %120 : vector<32x16xf32> to vector<1x32x16xf32>
    tpu.vector_store %arg9[%c0_50, %c0_51, %c0_52], %123 {strides = array<i32>} : memref<1x32x16xf32, #tpu.memory_space<vmem>>, vector<1x32x16xf32>,
    return
  }
  func.func @transform_0(%arg0: i32) -> (i32, i32, i32) {
    %c0_i32 = arith.constant 0 : i32
    %c0_i32_0 = arith.constant 0 : i32
    %c0_i32_1 = arith.constant 0 : i32
    return %arg0, %c0_i32, %c0_i32_0 : i32, i32, i32
  }
  func.func @transform_1(%arg0: i32) -> (i32, i32, i32) {
    %c0_i32 = arith.constant 0 : i32
    %c0_i32_0 = arith.constant 0 : i32
    %c0_i32_1 = arith.constant 0 : i32
    return %arg0, %c0_i32, %c0_i32_0 : i32, i32, i32
  }
  func.func @transform_2(%arg0: i32) -> (i32, i32) {
    %c0_i32 = arith.constant 0 : i32
    %c0_i32_0 = arith.constant 0 : i32
    %c0_i32_1 = arith.constant 0 : i32
    return %c0_i32, %c0_i32_0 : i32, i32
  }
  func.func @transform_3(%arg0: i32) -> (i32, i32) {
    %c0_i32 = arith.constant 0 : i32
    %c0_i32_0 = arith.constant 0 : i32
    %c0_i32_1 = arith.constant 0 : i32
    return %c0_i32, %c0_i32_0 : i32, i32
  }
  func.func @transform_4(%arg0: i32) -> (i32, i32) {
    %c0_i32 = arith.constant 0 : i32
    %c0_i32_0 = arith.constant 0 : i32
    %c0_i32_1 = arith.constant 0 : i32
    return %c0_i32, %c0_i32_0 : i32, i32
  }
  func.func @transform_5(%arg0: i32) -> (i32, i32, i32) {
    %c0_i32 = arith.constant 0 : i32
    %c0_i32_0 = arith.constant 0 : i32
    %c0_i32_1 = arith.constant 0 : i32
    %c0_i32_2 = arith.constant 0 : i32
    return %c0_i32, %c0_i32_0, %c0_i32_1 : i32, i32, i32
  }
  func.func @transform_6(%arg0: i32) -> (i32, i32, i32) {
    %c0_i32 = arith.constant 0 : i32
    %c0_i32_0 = arith.constant 0 : i32
    %c0_i32_1 = arith.constant 0 : i32
    %c0_i32_2 = arith.constant 0 : i32
    return %c0_i32, %c0_i32_0, %c0_i32_1 : i32, i32, i32
  }
  func.func @transform_7(%arg0: i32) -> (i32, i32) {
    %c0_i32 = arith.constant 0 : i32
    %c0_i32_0 = arith.constant 0 : i32
    %c0_i32_1 = arith.constant 0 : i32
    return %c0_i32, %c0_i32_0 : i32, i32
  }
  func.func @transform_8(%arg0: i32) -> (i32, i32, i32) {
    %c0_i32 = arith.constant 0 : i32
    %c0_i32_0 = arith.constant 0 : i32
    %c0_i32_1 = arith.constant 0 : i32
    return %arg0, %c0_i32, %c0_i32_0 : i32, i32, i32
  }
}

</mosaic_0001>

<bundles_post_ra>
// kernel: tpu_custom_call.1
= control target key start
LH: loop header
LB: loop body
LE: loop exit
PB: predicated region body
PF: predicated region fallthrough
CT: control target
= control target key end

     0   :  { %s1801_s27 = smov 0   ;;  %s2215_s0 = inlined_call_operand.vmem [shape: f32[2,64,16], index: 0, kind: input, shape index: {}]   ;;  %s2216_s1 = inlined_call_operand.vmem [shape: f32[2,64,24], index: 1, kind: input, shape index: {}]   ;;  %s2217_s2 = inlined_call_operand.vmem [shape: bf16[128,64], index: 2, kind: input, shape index: {}]   ;;  %s2218_s3 = inlined_call_operand.vmem [shape: bf16[192,64], index: 3, kind: input, shape index: {}]   ;;  %s2219_s4 = inlined_call_operand.vmem [shape: bf16[64,32], index: 4, kind: input, shape index: {}]   ;;  %s2220_s5 = inlined_call_operand.vmem [shape: f32[3,64,16], index: 5, kind: input, shape index: {}]   ;;  %s2221_s6 = inlined_call_operand.vmem [shape: f32[3,64,24], index: 6, kind: input, shape index: {}]   ;;  %s2222_s7 = inlined_call_operand.vmem [shape: f32[32,1], index: 7, kind: input, shape index: {}]   ;;  %s2223_s8 = inlined_call_operand.vmem [shape: f32[2,32,16], index: 8, kind: output, shape index: {}]  }
   0x1 LB: > { %s1491_s28 = sadd.s32 4294967295, %s1753_s27   ;;  %p1495_p0 = scmp.ge.s32.totalorder %s1753_s27, 1  ;;  %s1753_s27 = sphi %s1801_s27, %s18_s27  }
   0x2   : > { %p272_p1 = scmp.lt.s32.totalorder %s1753_s27, 3 }
   0x4   : > { %p273_p2 = pnand %p1495_p0, %p272_p1 }
   0x5   : > { %p311_p3 = scmp.lt.s32.totalorder (!%p273_p2), %s1491_s28, 1 }
   0x6   : > { %276 = sbr.rel (%p273_p2) target bundleno = 2253 (0x8cd), region = 52 }
   0xb   : > { %s2225_s28 = smov (!%p311_p3, %s1491_s28), 1  ;;  %v1671_v12 = vld [vmem:[%s2217_s2] sm:$0xff]  ;;  %vm407_vm0 = vcmask 523264   ;;  %v1672_v13 = vld [vmem:[%s2217_s2 + $0x8] sm:$0xff]  ;;  %v1673_v14 = vld [vmem:[%s2217_s2 + $0x10] sm:$0xff]  ;;  %vm846_vm1 = vcmask 130048  }
   0xc   : > { %s1668_s29 = sshll.u32 %s2225_s28, 6  ;;  %v1674_v15 = vld [vmem:[%s2217_s2 + $0x18] sm:$0xff]  ;;  %v1675_v16 = vld [vmem:[%s2217_s2 + $0x20] sm:$0xff]  ;;  %v1676_v29 = vld [vmem:[%s2217_s2 + $0x28] sm:$0xff]  ;;  %vm864_vm2 = vcmask 195584   ;;  %s1670_s26 = sshll.u32 %s2225_s28, 5 }
   0xd   : > { %s315_s10 = scalar_lea.vmem %s2215_s0, %s1668_s29  ;;  %s320_s23 = scalar_lea.vmem %s2216_s1, %s1668_s29  ;;  %v1680_v30 = vld [vmem:[%s2218_s3 + $0x8] sm:$0xff]  ;;  %v1677_v31 = vld [vmem:[%s2217_s2 + $0x30] sm:$0xff]  ;;  %v1678_v33 = vld [vmem:[%s2217_s2 + $0x38] sm:$0xff] }
   0xe   : > { %v333_v0 = vld [vmem:[%s315_s10 + $0x30] sm:$0xff]  ;;  %v334_v1 = vld [vmem:[%s315_s10 + $0x38] sm:$0xff]  ;;  %v331_v2 = vld [vmem:[%s315_s10 + $0x20] sm:$0xff]  ;;  %s325_s9 = scalar_lea.vmem %s2223_s8, %s1670_s26 }
   0xf   : > { %v338_v3 = vpack.c.bf16 %v334_v1, %v333_v0  ;;  %v332_v4 = vld [vmem:[%s315_s10 + $0x28] sm:$0xff]  ;;  %v329_v6 = vld [vmem:[%s315_s10 + $0x10] sm:$0xff]  ;;  %v330_v7 = vld [vmem:[%s315_s10 + $0x18] sm:$0xff] }
  0x10   : > { %v337_v5 = vpack.c.bf16 %v332_v4, %v331_v2  ;;  %v336_v8 = vpack.c.bf16 %v330_v7, %v329_v6  ;;  %v327_v9 = vld [vmem:[%s315_s10] sm:$0xff]  ;;  %v328_v10 = vld [vmem:[%s315_s10 + $0x8] sm:$0xff]  ;;  %v345_v17 = vld [vmem:[%s320_s23 + $0x30] sm:$0xff] }
  0x11   : > { %436 = vmatpush.bf16.msra.mxu0 %v338_v3  ;;  %v335_v11 = vpack.c.bf16 %v328_v10, %v327_v9  ;;  %v346_v18 = vld [vmem:[%s320_s23 + $0x38] sm:$0xff]  ;;  %v343_v19 = vld [vmem:[%s320_s23 + $0x20] sm:$0xff]  ;;  %v344_v21 = vld [vmem:[%s320_s23 + $0x28] sm:$0xff] }
  0x12   : > { %v350_v20 = vpack.c.bf16 %v346_v18, %v345_v17  ;;  %v349_v22 = vpack.c.bf16 %v344_v21, %v343_v19  ;;  %v341_v23 = vld [vmem:[%s320_s23 + $0x10] sm:$0xff]  ;;  %v342_v24 = vld [vmem:[%s320_s23 + $0x18] sm:$0xff]  ;;  %v339_v26 = vld [vmem:[%s320_s23] sm:$0xff] }
  0x13   : > { %v348_v25 = vpack.c.bf16 %v342_v24, %v341_v23  ;;  %v340_v27 = vld [vmem:[%s320_s23 + $0x8] sm:$0xff]  ;;  %v1681_v32 = vld [vmem:[%s2218_s3 + $0x10] sm:$0xff]  ;;  %v1682_v34 = vld [vmem:[%s2218_s3 + $0x18] sm:$0xff] }
  0x14   : > { %1695 = vmatpush.bf16.msra.mxu1 %v350_v20  ;;  %1696 = vmatpush.bf16.msra.mxu3 %v350_v20  ;;  %v347_v28 = vpack.c.bf16 %v340_v27, %v339_v26  ;;  %v1683_v36 = vld [vmem:[%s2218_s3 + $0x20] sm:$0xff]  ;;  %v1684_v40 = vld [vmem:[%s2218_s3 + $0x28] sm:$0xff]  ;;  %v1685_v43 = vld [vmem:[%s2218_s3 + $0x30] sm:$0xff] }
  0x15   : > { %437 = vmatpush.bf16.msra.mxu0 %v337_v5  ;;  %v1679_v39 = vld [vmem:[%s2218_s3] sm:$0xff]  ;;  %v1686_v46 = vld [vmem:[%s2218_s3 + $0x38] sm:$0xff]  ;;  %v671_v54 = vld [vmem:[%s2220_s5 + $0x8] sm:$0xff] }
  0x16   : > { %v1602_v48 = vld [vmem:[%s2220_s5 + $0x40] sm:$0xff]  ;;  %v1603_v55 = vld [vmem:[%s2220_s5 + $0x48] sm:$0xff]  ;;  %v1604_v1 = vld [vmem:[%s2220_s5 + $0x50] sm:$0xff] }
  0x17   : > { %v670_v49 = vld [vmem:[%s2220_s5] sm:$0xff]  ;;  %v1611_v61 = vld [vmem:[%s2220_s5 + $0x88] sm:$0xff]  ;;  %v672_v3 = vld [vmem:[%s2220_s5 + $0x10] sm:$0xff] }
  0x18   : > { %1697 = vmatpush.bf16.msra.mxu1 %v349_v22  ;;  %1698 = vmatpush.bf16.msra.mxu3 %v349_v22  ;;  %v1610_v56 = vld [vmem:[%s2220_s5 + $0x80] sm:$0xff]  ;;  %v1613_v19 = vld [vmem:[%s2220_s5 + $0x98] sm:$0xff] }
  0x19   : > { %438 = vmatpush.bf16.msra.mxu0 %v336_v8  ;;  %v674_v24 = vld [vmem:[%s2220_s5 + $0x20] sm:$0xff] }
  0x1c   : > { %1699 = vmatpush.bf16.msra.mxu1 %v348_v25  ;;  %1700 = vmatpush.bf16.msra.mxu3 %v348_v25 }
  0x1d   : > { %439 = vmatpush.bf16.msra.mxu0 %v335_v11 }
  0x20   : > { %1534 = vmatmul.msk.bf16.vlgmr.msra.gmra.mxu0 %vm407_vm0, %v1671_v12  ;;  %1701 = vmatpush.bf16.msra.mxu1 %v347_v28  ;;  %v673_v12 = vld [vmem:[%s2220_s5 + $0x18] sm:$0xff] }
  0x21   : > { %605 = vmatpush.bf16.msrb.mxu0 %v350_v20  ;;  %1702 = vmatpush.bf16.msra.mxu3 %v347_v28 }
  0x23   : > { %1591 = vmatmul.msk.bf16.vlgmr.msra.gmra.mxu1 %vm407_vm0, %v1680_v30 }
  0x25   : > { %606 = vmatpush.bf16.msrb.mxu0 %v349_v22 }
  0x29   : > { %607 = vmatpush.bf16.msrb.mxu0 %v348_v25  ;;  %v1606_v25 = vld [vmem:[%s2220_s5 + $0x60] sm:$0xff] }
  0x2d   : > { %608 = vmatpush.bf16.msrb.mxu0 %v347_v28 }
  0x30   : > { %1535 = vmatmul.msk.bf16.gmra.mxu0 %vm407_vm0, %v1672_v13  ;;  %v1605_v13 = vld [vmem:[%s2220_s5 + $0x58] sm:$0xff] }
  0x33   : > { %1592 = vmatmul.msk.bf16.gmra.mxu1 %vm407_vm0, %v1681_v32 }
  0x40   : > { %1536 = vmatmul.msk.bf16.gmra.mxu0 %vm407_vm0, %v1673_v14  ;;  %v1612_v14 = vld [vmem:[%s2220_s5 + $0x90] sm:$0xff] }
  0x43   : > { %1593 = vmatmul.msk.bf16.gmra.mxu1 %vm407_vm0, %v1682_v34 }
  0x50   : > { %1537 = vmatmul.msk.bf16.gmra.mxu0 %vm407_vm0, %v1674_v15 }
  0x53   : > { %1594 = vmatmul.msk.bf16.gmra.mxu1 %vm407_vm0, %v1683_v36  ;;  %v1607_v36 = vld [vmem:[%s2220_s5 + $0x68] sm:$0xff] }
  0x60   : > { %1538 = vmatmul.msk.bf16.gmra.mxu0 %vm407_vm0, %v1675_v16 }
  0x63   : > { %1595 = vmatmul.msk.bf16.gmra.mxu1 %vm407_vm0, %v1684_v40 }
  0x70   : > { %1539 = vmatmul.msk.bf16.gmra.mxu0 %vm407_vm0, %v1676_v29 }
  0x73   : > { %1596 = vmatmul.msk.bf16.gmra.mxu1 %vm407_vm0, %v1685_v43  ;;  %v1615_v43 = vld [vmem:[%s2220_s5 + $0xa8] sm:$0xff] }
  0x80   : > { %1540 = vmatmul.msk.bf16.gmra.mxu0 %vm407_vm0, %v1677_v31 }
  0x83   : > { %1597 = vmatmul.msk.bf16.gmra.mxu1 %vm407_vm0, %v1686_v46 }
  0x90   : > { %1541 = vmatmul.msk.bf16.gmra.mxu0 %vm407_vm0, %v1678_v33 }
  0x9d   : > { %v441_v35 = vpop.f32.mrf.mxu0 }
  0x9e   : > { %v722_v52 = vmul.f32 %v670_v49, %v441_v35  ;;  %v675_v35 = vld [vmem:[%s2220_s5 + $0x28] sm:$0xff] }
  0xa0   : > { %1590 = vmatmul.msk.bf16.vlgmr.msrb.gmra.mxu0 %vm407_vm0, %v1679_v39  ;;  %v1910_v8 = vpop.f32.mrf.mxu1 }
  0xa5   : > { %v443_v37 = vpop.f32.mrf.mxu0 }
  0xa6   : > { %v723_v58 = vmul.f32 %v671_v54, %v443_v37  ;;  %v1614_v37 = vld [vmem:[%s2220_s5 + $0xa0] sm:$0xff] }
  0xa8   : > { %v1924_v20 = vpop.f32.mrf.mxu1 }
  0xad   : > { %v446_v38 = vpop.f32.mrf.mxu0 }
  0xae   : > { %v724_v9 = vmul.f32 %v672_v3, %v446_v38 }
  0xb0   : > { %v1932_v32 = vpop.f32.mrf.mxu1 }
  0xb5   : > { %v448_v41 = vpop.f32.mrf.mxu0 }
  0xb6   : > { %v725_v16 = vmul.f32 %v673_v12, %v448_v41 }
  0xbd   : > { %v451_v42 = vpop.f32.mrf.mxu0 }
  0xbe   : > { %v726_v28 = vmul.f32 %v674_v24, %v451_v42  ;;  %v1943_v42 = vpop.f32.mrf.mxu1 }
  0xc5   : > { %v453_v44 = vpop.f32.mrf.mxu0 }
  0xc6   : > { %v727_v39 = vmul.f32 %v675_v35, %v453_v44 }
  0xcd   : > { %v1878_v45 = vpop.f32.mrf.mxu0 }
  0xd5   : > { %v1884_v47 = vpop.f32.mrf.mxu0 }
  0xdd   : > { %v461_v50 = vpop.f32.mrf.mxu0 }
  0xde   : > { %v730_v51 = vmul.f32 %v1602_v48, %v461_v50  ;;  %v676_v50 = vld [vmem:[%s2220_s5 + $0x30] sm:$0xff] }
  0xe0   : > { %v738_v53 = vadd.f32 %v730_v51, %v722_v52  ;;  %v1608_v51 = vld [vmem:[%s2220_s5 + $0x70] sm:$0xff] }
  0xe2   : > { %v746_v60 = vadd.f32 %v1610_v56, %v738_v53  ;;  %v728_v53 = vmul.f32 %v676_v50, %v1878_v45  ;;  %v1609_v45 = vld [vmem:[%s2220_s5 + $0x78] sm:$0xff] }
  0xe4   : > { %v754_v0 = vpack.c.bf16 %v746_v60, %v746_v60  ;;  %v677_v60 = vld [vmem:[%s2220_s5 + $0x38] sm:$0xff] }
  0xe5   : > { %v463_v57 = vpop.f32.mrf.mxu0 }
  0xe6   : > { %v731_v59 = vmul.f32 %v1603_v55, %v463_v57  ;;  %v820_v6 = vunpack.c.l.b16 %v754_v0  ;;  %v1959_v57 = vpop.f32.mrf.mxu1 }
  0xe8   : > { %v739_v62 = vadd.f32 %v731_v59, %v723_v58 }
  0xea   : > { %v747_v63 = vadd.f32 %v1611_v61, %v739_v62  ;;  %v1616_v61 = vld [vmem:[%s2220_s5 + $0xb0] sm:$0xff] }
  0xec   : > { %v755_v2 = vpack.c.bf16 %v747_v63, %v747_v63  ;;  %v729_v63 = vmul.f32 %v677_v60, %v1884_v47 }
  0xed   : > { %v466_v4 = vpop.f32.mrf.mxu0 }
  0xee   : > { %v732_v5 = vmul.f32 %v1604_v1, %v466_v4  ;;  %v821_v7 = vunpack.c.l.b16 %v755_v2  ;;  %v1617_v2 = vld [vmem:[%s2220_s5 + $0xb8] sm:$0xff]  ;;  %v1976_v3 = vpop.f32.mrf.mxu1 }
  0xf0   : > { %v822_v10 = vpack.c.b16 %v821_v7, %v820_v6  ;;  %v740_v11 = vadd.f32 %v732_v5, %v724_v9 }
  0xf2   : > { %824 = vxpose.xlu0.c.b16.start.end [1/1] (short) (narrow) %v822_v10, 16  ;;  %v748_v18 = vadd.f32 %v1612_v14, %v740_v11  ;;  %v698_v14 = vld [vmem:[%s2221_s6 + $0x10] sm:$0xff] }
  0xf4   : > { %v756_v23 = vpack.c.bf16 %v748_v18, %v748_v18  ;;  %v1620_v18 = vld [vmem:[%s2221_s6 + $0x50] sm:$0xff] }
  0xf5   : > { %v468_v15 = vpop.f32.mrf.mxu0 }
  0xf6   : > { %v733_v17 = vmul.f32 %v1605_v13, %v468_v15  ;;  %v916_v30 = vunpack.c.l.b16 %v756_v23  ;;  %v630_v11 = vpop.f32.mrf.mxu1  ;;  %v1618_v13 = vld [vmem:[%s2221_s6 + $0x40] sm:$0xff] }
  0xf7   : > { %v696_v15 = vld [vmem:[%s2221_s6] sm:$0xff] }
  0xf8   : > { %v741_v21 = vadd.f32 %v733_v17, %v725_v16  ;;  %v770_v16 = vmul.f32 %v1618_v13, %v630_v11  ;;  %v1631_v13 = vld [vmem:[%s2221_s6 + $0xa8] sm:$0xff] }
  0xfa   : > { %v749_v22 = vadd.f32 %v1613_v19, %v741_v21  ;;  %v764_v19 = vmul.f32 %v698_v14, %v1910_v8  ;;  %v697_v8 = vld [vmem:[%s2221_s6 + $0x8] sm:$0xff] }
  0xfc   : > { %v757_v26 = vpack.c.bf16 %v749_v22, %v749_v22 }
  0xfd   : > { %v471_v27 = vpop.f32.mrf.mxu0 }
  0xfe   : > { %v734_v29 = vmul.f32 %v1606_v25, %v471_v27  ;;  %v917_v31 = vunpack.c.l.b16 %v757_v26  ;;  %v632_v12 = vpop.f32.mrf.mxu1  ;;  %v1619_v25 = vld [vmem:[%s2221_s6 + $0x48] sm:$0xff]  ;;  %v1626_v26 = vld [vmem:[%s2221_s6 + $0x80] sm:$0xff] }
 0x100   : > { %v742_v33 = vadd.f32 %v734_v29, %v726_v28  ;;  %v918_v34 = vpack.c.b16 %v917_v31, %v916_v30  ;;  %v699_v28 = vld [vmem:[%s2221_s6 + $0x18] sm:$0xff]  ;;  %v1628_v29 = vld [vmem:[%s2221_s6 + $0x90] sm:$0xff]  ;;  %v771_v30 = vmul.f32 %v1619_v25, %v632_v12 }
 0x101   : > { %v765_v35 = vmul.f32 %v699_v28, %v1924_v20  ;;  %v700_v20 = vld [vmem:[%s2221_s6 + $0x20] sm:$0xff]  ;;  %v1632_v28 = vld [vmem:[%s2221_s6 + $0xb0] sm:$0xff] }
 0x102   : > { %920 = vxpose.xlu0.c.b16.start.end [1/1] (short) (narrow) %v918_v34, 16  ;;  %v750_v41 = vadd.f32 %v1614_v37, %v742_v33  ;;  %v1621_v34 = vld [vmem:[%s2221_s6 + $0x58] sm:$0xff] }
 0x104   : > { %v758_v49 = vpack.c.bf16 %v750_v41, %v750_v41 }
 0x105   : > { %v473_v38 = vpop.f32.mrf.mxu0 }
 0x106   : > { %v735_v40 = vmul.f32 %v1607_v36, %v473_v38  ;;  %v1955_v55 = vunpack.c.l.b16 %v758_v49  ;;  %v635_v22 = vpop.f32.mrf.mxu1 }
 0x107   : > { %v772_v24 = vmul.f32 %v1620_v18, %v635_v22  ;;  %v1624_v18 = vld [vmem:[%s2221_s6 + $0x70] sm:$0xff] }
 0x108   : > { %v743_v46 = vadd.f32 %v735_v40, %v727_v39  ;;  %v1627_v39 = vld [vmem:[%s2221_s6 + $0x88] sm:$0xff] }
 0x109   : > { %v780_v27 = vadd.f32 %v772_v24, %v764_v19 }
 0x10a   : > { %v751_v48 = vadd.f32 %v1615_v43, %v743_v46  ;;  %v1629_v46 = vld [vmem:[%s2221_s6 + $0x98] sm:$0xff] }
 0x10b   : > { %v788_v37 = vadd.f32 %v1628_v29, %v780_v27  ;;  %v703_v27 = vld [vmem:[%s2221_s6 + $0x38] sm:$0xff] }
 0x10c   : > { %v759_v44 = vpack.c.bf16 %v751_v48, %v751_v48 }
 0x10d   : > { %v476_v52 = vpop.f32.mrf.mxu0  ;;  %v796_v50 = vpack.c.bf16 %v788_v37, %v788_v37 }
 0x10e   : > { %v736_v54 = vmul.f32 %v1608_v51, %v476_v52  ;;  %v1957_v56 = vunpack.c.l.b16 %v759_v44  ;;  %v637_v38 = vpop.f32.mrf.mxu1 }
 0x10f   : > { %v773_v41 = vmul.f32 %v1621_v34, %v637_v38 }
 0x110   : > { %v744_v58 = vadd.f32 %v736_v54, %v728_v53  ;;  %v1106_v59 = vpack.c.b16 %v1957_v56, %v1955_v55  ;;  %v1622_v53 = vld [vmem:[%s2221_s6 + $0x60] sm:$0xff]  ;;  %v766_v54 = vmul.f32 %v700_v20, %v1932_v32  ;;  %v1623_v32 = vld [vmem:[%s2221_s6 + $0x68] sm:$0xff] }
 0x111   : > { %v781_v48 = vadd.f32 %v773_v41, %v765_v35 }
 0x112   : > { %v752_v0 = vadd.f32 %v1616_v61, %v744_v58  ;;  %v938_v61 = vunpack.c.l.b16 %v796_v50 }
 0x113   : > { %v789_v52 = vadd.f32 %v1629_v46, %v781_v48 }
 0x114   : > { %v760_v5 = vpack.c.bf16 %v752_v0, %v752_v0 }
 0x115   : > { %v478_v62 = vpop.f32.mrf.mxu0  ;;  %v797_v60 = vpack.c.bf16 %v789_v52, %v789_v52  ;;  %v1687_v52 = vld [vmem:[%s2218_s3 + $0x40] sm:$0xff] }
 0x116   : > { %v737_v1 = vmul.f32 %v1609_v45, %v478_v62  ;;  %v1978_v9 = vunpack.c.l.b16 %v760_v5  ;;  %v640_v45 = vpop.f32.mrf.mxu1  ;;  %v1630_v5 = vld [vmem:[%s2221_s6 + $0xa0] sm:$0xff]  ;;  %1598 = vmatmul.msk.bf16.gmra.mxu1 %vm407_vm0, %v1687_v52 }
 0x117   : > { %v774_v62 = vmul.f32 %v1622_v53, %v640_v45  ;;  %v939_v0 = vunpack.c.l.b16 %v797_v60  ;;  %v1688_v53 = vld [vmem:[%s2218_s3 + $0x48] sm:$0xff] }
 0x118   : > { %v745_v4 = vadd.f32 %v737_v1, %v729_v63 }
 0x119   : > { %v782_v1 = vadd.f32 %v774_v62, %v766_v54 }
 0x11a   : > { %v753_v6 = vadd.f32 %v1617_v2, %v745_v4  ;;  %v940_v2 = vpack.c.b16 %v939_v0, %v938_v61  ;;  %v701_v4 = vld [vmem:[%s2221_s6 + $0x28] sm:$0xff] }
 0x11c   : > { %v761_v7 = vpack.c.bf16 %v753_v6, %v753_v6  ;;  %v767_v6 = vmul.f32 %v701_v4, %v1943_v42 }
 0x11d   : > { %v610_v17 = vpop.f32.mrf.mxu0 }
 0x11e   : > { %v1980_v10 = vunpack.c.l.b16 %v761_v7  ;;  %v762_v21 = vmul.f32 %v696_v15, %v610_v17  ;;  %v790_v7 = vadd.f32 %v1630_v5, %v782_v1  ;;  %v642_v11 = vpop.f32.mrf.mxu1 }
 0x11f   : > { %v775_v12 = vmul.f32 %v1623_v32, %v642_v11 }
 0x120   : > { %v1251_v47 = vpack.c.b16 %v1980_v10, %v1978_v9  ;;  %v778_v23 = vadd.f32 %v770_v16, %v762_v21  ;;  %v798_v14 = vpack.c.bf16 %v790_v7, %v790_v7  ;;  %v702_v16 = vld [vmem:[%s2221_s6 + $0x30] sm:$0xff]  ;;  %v1691_v9 = vld [vmem:[%s2219_s4] sm:$0xff] }
 0x121   : > { %v783_v15 = vadd.f32 %v775_v12, %v767_v6  ;;  %v768_v42 = vmul.f32 %v702_v16, %v1959_v57  ;;  %v1625_v57 = vld [vmem:[%s2221_s6 + $0x78] sm:$0xff]  ;;  %v1689_v16 = vld [vmem:[%s2218_s3 + $0x50] sm:$0xff] }
 0x122   : > { %v786_v31 = vadd.f32 %v1626_v26, %v778_v23  ;;  %v2049_v19 = vunpack.c.l.b16 %v798_v14  ;;  %1600 = vmatmul.msk.bf16.vlgmr.msra.gmra.mxu3 %vm407_vm0, %v1689_v16 }
 0x123   : > { %v791_v17 = vadd.f32 %v1631_v13, %v783_v15 }
 0x124   : > { %v794_v43 = vpack.c.bf16 %v786_v31, %v786_v31 }
 0x125   : > { %v612_v33 = vpop.f32.mrf.mxu0  ;;  %v799_v21 = vpack.c.bf16 %v791_v17, %v791_v17  ;;  %v1690_v17 = vld [vmem:[%s2218_s3 + $0x58] sm:$0xff] }
 0x126   : > { %v763_v36 = vmul.f32 %v697_v8, %v612_v33  ;;  %v842_v44 = vunpack.c.l.b16 %v794_v43  ;;  %v645_v22 = vpop.f32.mrf.mxu1  ;;  %v769_v8 = vmul.f32 %v703_v27, %v1976_v3  ;;  %v1633_v33 = vld [vmem:[%s2221_s6 + $0xb8] sm:$0xff]  ;;  %1599 = vmatmul.msk.bf16.gmra.mxu1 %vm407_vm0, %v1688_v53 }
 0x127   : > { %v2051_v23 = vunpack.c.l.b16 %v799_v21  ;;  %v776_v24 = vmul.f32 %v1624_v18, %v645_v22  ;;  %v1692_v18 = vld [vmem:[%s2219_s4 + $0x8] sm:$0xff] }
 0x128   : > { %v779_v40 = vadd.f32 %v771_v30, %v763_v36 }
 0x129   : > { %v784_v25 = vadd.f32 %v776_v24, %v768_v42  ;;  %v1128_v26 = vpack.c.b16 %v2051_v23, %v2049_v19 }
 0x12a   : > { %v787_v49 = vadd.f32 %v1627_v39, %v779_v40 }
 0x12b   : > { %v792_v29 = vadd.f32 %v1632_v28, %v784_v25 }
 0x12c   : > { %v795_v51 = vpack.c.bf16 %v787_v49, %v787_v49 }
 0x12d   : > { %v800_v34 = vpack.c.bf16 %v792_v29, %v792_v29 }
 0x12e   : > { %v843_v58 = vunpack.c.l.b16 %v795_v51  ;;  %v647_v30 = vpop.f32.mrf.mxu1 }
 0x12f   : > { %v777_v31 = vmul.f32 %v1625_v57, %v647_v30  ;;  %v2068_v37 = vunpack.c.l.b16 %v800_v34 }
 0x130   : > { %v844_v63 = vpack.c.b16 %v843_v58, %v842_v44 }
 0x131   : > { %v785_v35 = vadd.f32 %v777_v31, %v769_v8 }
 0x132   : > { %857 = vmatpush.bf16.msra.mxu2 %v844_v63  ;;  %1601 = vmatmul.msk.bf16.gmra.mxu3 %vm407_vm0, %v1690_v17 }
 0x133   : > { %v793_v36 = vadd.f32 %v1633_v33, %v785_v35 }
 0x135   : > { %v801_v38 = vpack.c.bf16 %v793_v36, %v793_v36 }
 0x136   : > { %952 = vmatpush.bf16.msrb.mxu2 %v940_v2 }
 0x137   : > { %v2070_v39 = vunpack.c.l.b16 %v801_v38 }
 0x139   : > { %v1273_v40 = vpack.c.b16 %v2070_v39, %v2068_v37 }
 0x193   : > { %v650_v42 = vpop.f32.mrf.mxu1 }
 0x194   : > { %v802_v27 = vpack.c.bf16 %v650_v42, %v650_v42 }
 0x196   : > { %v890_v31 = vunpack.c.l.b16 %v802_v27 }
 0x19b   : > { %v652_v24 = vpop.f32.mrf.mxu1 }
 0x19c   : > { %v803_v28 = vpack.c.bf16 %v652_v24, %v652_v24 }
 0x19e   : > { %v832_v3 = vpop.trf.xlu0  ;;  %v891_v33 = vunpack.c.l.b16 %v803_v28 }
 0x19f   : > { %1634 = vmatmul.msk.bf16.vlgmr.msra.gmra.mxu2 %vm846_vm1, %v832_v3 }
 0x1a0   : > { %v892_v35 = vpack.c.b16 %v891_v33, %v890_v31 }
 0x1a3   : > { %v655_v30 = vpop.f32.mrf.mxu1 }
 0x1a5   : > { %v660_v52 = vpop.f32.mrf.mxu3 }
 0x1a6   : > { %v806_v53 = vpack.c.bf16 %v660_v52, %v660_v52 }
 0x1ab   : > { %v657_v3 = vpop.f32.mrf.mxu1 }
 0x1ae   : > { %v928_v41 = vpop.trf.xlu0 }
 0x1af   : > { %1636 = vmatmul.msk.bf16.vlgmr.msrb.gmra.mxu2 %vm846_vm1, %v928_v41 }
 0x222   : > { %v859_v43 = vpop.f32.mrf.mxu2 }
 0x223   : > { %v865_v46 = vsel %vm864_vm2, %v859_v43, -inf }
 0x224   : > { %866 = vmax.xlane.f32.xlu1 %v865_v46  ;;  %v804_v46 = vpack.c.bf16 %v655_v30, %v655_v30 }
 0x22a   : > { %v861_v48 = vpop.f32.mrf.mxu2 }
 0x22b   : > { %v868_v49 = vsel %vm864_vm2, %v861_v48, -inf }
 0x22c   : > { %869 = vmax.xlane.f32.xlu1 %v868_v49 }
 0x232   : > { %v954_v50 = vpop.f32.mrf.mxu2 }
 0x233   : > { %v959_v20 = vsel %vm864_vm2, %v954_v50, -inf }
 0x234   : > { %960 = vmax.xlane.f32.xlu2 %v959_v20  ;;  %v984_v20 = vunpack.c.l.b16 %v804_v46 }
 0x23a   : > { %v956_v51 = vpop.f32.mrf.mxu2 }
 0x23b   : > { %v962_v44 = vsel %vm864_vm2, %v956_v51, -inf }
 0x23c   : > { %963 = vmax.xlane.f32.xlu2 %v962_v44 }
 0x297   : > { %v867_v54 = vpop.xlane.xlu1 %866 }
 0x298   : > { %v871_v58 = vsub.f32 %v859_v43, %v867_v54  ;;  %v662_v54 = vpop.f32.mrf.mxu3 }
 0x29a   : > { %v873_v60 = vmul.f32 1.442695, %v871_v58  ;;  %v2110_v58 = vunpack.c.l.b16 %v806_v53 }
 0x29c   : > { %1715 = vpow2.f32 %v873_v60  ;;  %v807_v60 = vpack.c.bf16 %v662_v54, %v662_v54 }
 0x29f   : > { %v870_v61 = vpop.xlane.xlu1 %869 }
 0x2a0   : > { %v872_v45 = vsub.f32 %v861_v48, %v870_v61  ;;  %v805_v48 = vpack.c.bf16 %v657_v3, %v657_v3  ;;  %v2112_v61 = vunpack.c.l.b16 %v807_v60 }
 0x2a2   : > { %v1716_v62 = vpop.eup %1715  ;;  %v875_v63 = vmul.f32 1.442695, %v872_v45  ;;  %v1174_v45 = vpack.c.b16 %v2112_v61, %v2110_v58 }
 0x2a3   : > { %v877_v0 = vsel %vm864_vm2, %v1716_v62, 0.0 }
 0x2a4   : > { %1717 = vpow2.f32 %v875_v63  ;;  %878 = vadd.xlane.f32.xlu1 %v877_v0 }
 0x2a7   : > { %v961_v1 = vpop.xlane.xlu2 %960 }
 0x2a8   : > { %v965_v2 = vsub.f32 %v954_v50, %v961_v1 }
 0x2aa   : > { %v1718_v4 = vpop.eup %1717  ;;  %v967_v5 = vmul.f32 1.442695, %v965_v2 }
 0x2ab   : > { %v880_v32 = vsel %vm864_vm2, %v1718_v4, 0.0 }
 0x2ac   : > { %1719 = vpow2.f32 %v967_v5  ;;  %881 = vadd.xlane.f32.xlu2 %v880_v32 }
 0x2af   : > { %v964_v6 = vpop.xlane.xlu2 %963 }
 0x2b0   : > { %v966_v7 = vsub.f32 %v956_v51, %v964_v6  ;;  %v985_v51 = vunpack.c.l.b16 %v805_v48 }
 0x2b2   : > { %v1720_v11 = vpop.eup %1719  ;;  %v969_v12 = vmul.f32 1.442695, %v966_v7  ;;  %v986_v44 = vpack.c.b16 %v985_v51, %v984_v20 }
 0x2b3   : > { %v971_v13 = vsel %vm864_vm2, %v1720_v11, 0.0 }
 0x2b4   : > { %1721 = vpow2.f32 %v969_v12  ;;  %972 = vadd.xlane.f32.xlu0 %v971_v13 }
 0x2ba   : > { %v1722_v14 = vpop.eup %1721 }
 0x2bb   : > { %v974_v15 = vsel %vm864_vm2, %v1722_v14, 0.0 }
 0x2bc   : > { %975 = vadd.xlane.f32.xlu1 %v974_v15 }
 0x2d5   : > { %1014 = vxpose.xlu2.c.b16.start.end [1/1] (short) (narrow) %v1692_v18, 32 }
 0x2f6   : > { %1108 = vxpose.xlu1.c.b16.start.end [1/1] (short) (narrow) %v1106_v59, 16 }
 0x317   : > { %v879_v21 = vpop.xlane.xlu1 %878 }
 0x318   : > { %1723 = vrcp.f32 %v879_v21 }
 0x31e   : > { %v1724_v25 = vpop.eup %1723 }
 0x31f   : > { %v882_v22 = vpop.xlane.xlu2 %881  ;;  %v885_v56 = vmul.f32 %v1724_v25, %v1716_v62  ;;  %v665_v62 = vpop.f32.mrf.mxu3 }
 0x320   : > { %1725 = vrcp.f32 %v882_v22  ;;  %v808_v63 = vpack.c.bf16 %v665_v62, %v665_v62 }
 0x322   : > { %v2116_v1 = vunpack.c.l.b16 %v808_v63 }
 0x326   : > { %v1726_v55 = vpop.eup %1725 }
 0x327   : > { %v886_v59 = vmul.f32 %v1726_v55, %v1718_v4  ;;  %v973_v8 = vpop.xlane.xlu0 %972  ;;  %v667_v0 = vpop.f32.mrf.mxu3 }
 0x328   : > { %1727 = vrcp.f32 %v973_v8  ;;  %v809_v2 = vpack.c.bf16 %v667_v0, %v667_v0 }
 0x329   : > { %v887_v57 = vpack.c.bf16 %v886_v59, %v885_v56 }
 0x32a   : > { %v2118_v4 = vunpack.c.l.b16 %v809_v2  ;;  %v1694_v2 = vld [vmem:[%s2219_s4 + $0x18] sm:$0xff] }
 0x32b   : > { %v897_v29 = vsel %vm864_vm2, %v887_v57, 0 }
 0x32c   : > { %906 = vmatpush.bf16.xpose.msrb.mxu3 %v897_v29  ;;  %v1319_v5 = vpack.c.b16 %v2118_v4, %v2116_v1  ;;  %v1392_v1 = vld [vmem:[%s2222_s7] sm:$0xff] }
 0x32e   : > { %v1728_v36 = vpop.eup %1727 }
 0x32f   : > { %v976_v34 = vpop.xlane.xlu1 %975  ;;  %v979_v41 = vmul.f32 %v1728_v36, %v1720_v11 }
 0x330   : > { %1729 = vrcp.f32 %v976_v34 }
 0x333   : > { %1635 = vmatmul.msk.bf16.vlgmr.msrb.gmra.mxu3 %vm864_vm2, %v892_v35 }
 0x336   : > { %v1730_v38 = vpop.eup %1729 }
 0x337   : > { %v980_v43 = vmul.f32 %v1730_v38, %v1722_v14 }
 0x339   : > { %v981_v49 = vpack.c.bf16 %v980_v43, %v979_v41 }
 0x33b   : > { %v991_v50 = vsel %vm864_vm2, %v981_v49, 0 }
 0x33c   : > { %1000 = vmatpush.bf16.xpose.msra.mxu3 %v991_v50 }
 0x343   : > { %1637 = vmatmul.msk.bf16.vlgmr.msra.gmra.mxu3 %vm864_vm2, %v986_v44 }
 0x376   : > { %v1022_v14 = vpop.trf.xlu2 }
 0x386   : > { %v1023_v15 = vpop.trf.xlu2 }
 0x3a2   : > { %v1116_v16 = vpop.trf.xlu1 }
 0x3b6   : > { %v908_v32 = vpop.f32.mrf.mxu3 }
 0x3be   : > { %v910_v6 = vpop.f32.mrf.mxu3 }
 0x3bf   : > { %v913_v7 = vpack.c.bf16 %v910_v6, %v908_v32  ;;  %v1693_v32 = vld [vmem:[%s2219_s4 + $0x10] sm:$0xff] }
 0x3c1   : > { %1090 = vmatpush.bf16.msrb.mxu3 %v913_v7 }
 0x3c6   : > { %v1002_v11 = vpop.f32.mrf.mxu3 }
 0x3ce   : > { %v1004_v12 = vpop.f32.mrf.mxu3 }
 0x3cf   : > { %v1007_v13 = vpack.c.bf16 %v1004_v12, %v1002_v11 }
 0x3d1   : > { %1043 = vmatpush.bf16.msra.mxu2 %v1007_v13 }
 0x3d4   : > { %1642 = vmatmul.msk.bf16.vlgmr.msra.gmra.mxu2 %vm846_vm1, %v1022_v14 }
 0x3d5   : > { %1140 = vmatpush.bf16.msrb.mxu2 %v1128_v26 }
 0x3e4   : > { %1643 = vmatmul.msk.bf16.gmra.mxu2 %vm846_vm1, %v1023_v15 }
 0x3f4   : > { %1650 = vmatmul.msk.bf16.vlgmr.msrb.gmra.mxu2 %vm846_vm1, %v1116_v16 }
 0x457   : > { %v2128_v17 = vpop.f32.mrf.mxu2 }
 0x45f   : > { %v2130_v18 = vpop.f32.mrf.mxu2 }
 0x467   : > { %v2132_v42 = vpop.f32.mrf.mxu2 }
 0x46f   : > { %v2134_v21 = vpop.f32.mrf.mxu2 }
 0x477   : > { %v1142_v22 = vpop.f32.mrf.mxu2 }
 0x478   : > { %v1147_v19 = vsel %vm864_vm2, %v1142_v22, -inf }
 0x479   : > { %1148 = vmax.xlane.f32.xlu2 %v1147_v19 }
 0x47f   : > { %v1144_v23 = vpop.f32.mrf.mxu2 }
 0x480   : > { %v1150_v26 = vsel %vm864_vm2, %v1144_v23, -inf }
 0x481   : > { %1151 = vmax.xlane.f32.xlu1 %v1150_v26  ;;  %v1394_v26 = vld [vmem:[%s2222_s7 + $0x10] sm:$0xff] }
 0x4bb   : > { %1253 = vxpose.xlu1.c.b16.start.end [1/1] (short) (narrow) %v1251_v47, 16 }
 0x4cb   : > { %1347 = vxpose.xlu1.c.b16.start.end [1/1] (short) (narrow) %v1694_v2, 32 }
 0x4ec   : > { %v1149_v24 = vpop.xlane.xlu2 %1148 }
 0x4ed   : > { %v1153_v25 = vsub.f32 %v1142_v22, %v1149_v24  ;;  %v1755_v24 = vmov 0  }
 0x4ef   : > { %v1155_v55 = vmul.f32 1.442695, %v1153_v25 }
 0x4f1   : > { %1731 = vpow2.f32 %v1155_v55 }
 0x4f4   : > { %v1152_v56 = vpop.xlane.xlu1 %1151 }
 0x4f5   : > { %v1154_v59 = vsub.f32 %v1144_v23, %v1152_v56  ;;  %v1393_v23 = vld [vmem:[%s2222_s7 + $0x8] sm:$0xff] }
 0x4f7   : > { %v1732_v27 = vpop.eup %1731  ;;  %v1157_v28 = vmul.f32 1.442695, %v1154_v59 }
 0x4f8   : > { %v1159_v57 = vsel %vm864_vm2, %v1732_v27, 0.0 }
 0x4f9   : > { %1733 = vpow2.f32 %v1157_v28  ;;  %1160 = vadd.xlane.f32.xlu0 %v1159_v57 }
 0x4ff   : > { %v1734_v8 = vpop.eup %1733 }
 0x500   : > { %v1162_v29 = vsel %vm864_vm2, %v1734_v8, 0.0 }
 0x501   : > { %1163 = vadd.xlane.f32.xlu0 %v1162_v29 }
 0x51e   : > { %1713 = vset.pattern.permute.xlu1 %v1755_v24 }
 0x52a   : > { %1061 = vxpose.xlu0.c.b16.start.end [1/1] (short) (narrow) %v1691_v9, 32 }
 0x535   : > { %1403 = vperm.xlu1 %1713, %v1393_v23  }
 0x567   : > { %v1261_v41 = vpop.trf.xlu1 }
 0x56c   : > { %v1161_v10 = vpop.xlane.xlu0 %1160 }
 0x56d   : > { %1735 = vrcp.f32 %v1161_v10 }
 0x573   : > { %v1736_v30 = vpop.eup %1735 }
 0x574   : > { %v1164_v47 = vpop.xlane.xlu0 %1163  ;;  %v1167_v33 = vmul.f32 %v1736_v30, %v1732_v27 }
 0x575   : > { %1737 = vrcp.f32 %v1164_v47 }
 0x577   : > { %v1355_v56 = vpop.trf.xlu1 }
 0x57b   : > { %v1738_v31 = vpop.eup %1737 }
 0x57c   : > { %v1168_v34 = vmul.f32 %v1738_v31, %v1734_v8 }
 0x57e   : > { %v1169_v35 = vpack.c.bf16 %v1168_v34, %v1167_v33 }
 0x580   : > { %v1179_v36 = vsel %vm864_vm2, %v1169_v35, 0 }
 0x581   : > { %1188 = vmatpush.bf16.xpose.msra.mxu3 %v1179_v36 }
 0x587   : > { %v1356_v59 = vpop.trf.xlu1 }
 0x591   : > { %1714 = vset.pattern.permute.xlu0 %v1755_v24 }
 0x5a7   : > { %v1404_v36 = vpop.permute.xlu1 %1403 }
 0x5d6   : > { %v1069_v38 = vpop.trf.xlu0 }
 0x5d7   : > { %1648 = vmatmul.msk.bf16.vlgmr.msrb.gmra.mxu3 %vm846_vm1, %v1069_v38 }
 0x5d8   : > { %1285 = vmatpush.bf16.msrb.mxu3 %v1273_v40 }
 0x5e6   : > { %v1070_v3 = vpop.trf.xlu0 }
 0x5e7   : > { %1649 = vmatmul.msk.bf16.gmra.mxu3 %vm846_vm1, %v1070_v3 }
 0x5f7   : > { %1651 = vmatmul.msk.bf16.vlgmr.msra.gmra.mxu3 %vm864_vm2, %v1174_v45 }
 0x607   : > { %1658 = vmatmul.msk.bf16.vlgmr.msrb.gmra.mxu3 %vm846_vm1, %v1261_v41 }
 0x65a   : > { %v2157_v43 = vpop.f32.mrf.mxu3 }
 0x65b   : > { %v1093_v29 = vadd.f32 %v2157_v43, %v2128_v17 }
 0x662   : > { %v2159_v46 = vpop.f32.mrf.mxu3 }
 0x663   : > { %v1095_v33 = vadd.f32 %v2159_v46, %v2130_v18 }
 0x66a   : > { %v2161_v48 = vpop.f32.mrf.mxu3 }
 0x66b   : > { %v1098_v3 = vadd.f32 %v2161_v48, %v2132_v42 }
 0x672   : > { %v2163_v49 = vpop.f32.mrf.mxu3 }
 0x673   : > { %v1100_v18 = vadd.f32 %v2163_v49, %v2134_v21 }
 0x67a   : > { %v1190_v37 = vpop.f32.mrf.mxu3 }
 0x682   : > { %v1192_v39 = vpop.f32.mrf.mxu3 }
 0x683   : > { %v1195_v40 = vpack.c.bf16 %v1192_v39, %v1190_v37 }
 0x685   : > { %1231 = vmatpush.bf16.msra.mxu2 %v1195_v40 }
 0x68a   : > { %v1287_v50 = vpop.f32.mrf.mxu3 }
 0x68b   : > { %v1292_v20 = vsel %vm864_vm2, %v1287_v50, -inf }
 0x68c   : > { %1293 = vmax.xlane.f32.xlu0 %v1292_v20 }
 0x692   : > { %v1289_v51 = vpop.f32.mrf.mxu3 }
 0x693   : > { %v1295_v44 = vsel %vm864_vm2, %v1289_v51, -inf }
 0x694   : > { %1296 = vmax.xlane.f32.xlu2 %v1295_v44 }
 0x6a0   : > { %1408 = vperm.xlu0 %1714, %v1394_v26  }
 0x6ff   : > { %v1294_v52 = vpop.xlane.xlu0 %1293 }
 0x700   : > { %v1298_v53 = vsub.f32 %v1287_v50, %v1294_v52 }
 0x702   : > { %v1300_v54 = vmul.f32 1.442695, %v1298_v53 }
 0x704   : > { %1739 = vpow2.f32 %v1300_v54 }
 0x707   : > { %v1297_v58 = vpop.xlane.xlu2 %1296 }
 0x708   : > { %v1299_v60 = vsub.f32 %v1289_v51, %v1297_v58 }
 0x70a   : > { %v1740_v61 = vpop.eup %1739  ;;  %v1302_v45 = vmul.f32 1.442695, %v1299_v60 }
 0x70b   : > { %v1304_v62 = vsel %vm864_vm2, %v1740_v61, 0.0 }
 0x70c   : > { %1741 = vpow2.f32 %v1302_v45  ;;  %1305 = vadd.xlane.f32.xlu2 %v1304_v62 }
 0x712   : > { %v1742_v63 = vpop.eup %1741  ;;  %v1409_v37 = vpop.permute.xlu0 %1408 }
 0x713   : > { %v1307_v0 = vsel %vm864_vm2, %v1742_v63, 0.0 }
 0x714   : > { %1308 = vadd.xlane.f32.xlu2 %v1307_v0 }
 0x73d   : > { %1202 = vxpose.xlu2.c.b16.start.end [1/1] (short) (narrow) %v1693_v32, 32 }
 0x77f   : > { %v1306_v6 = vpop.xlane.xlu2 %1305 }
 0x780   : > { %1743 = vrcp.f32 %v1306_v6 }
 0x786   : > { %v1744_v11 = vpop.eup %1743 }
 0x787   : > { %v1309_v7 = vpop.xlane.xlu2 %1308  ;;  %v1312_v13 = vmul.f32 %v1744_v11, %v1740_v61 }
 0x788   : > { %1745 = vrcp.f32 %v1309_v7 }
 0x78e   : > { %v1746_v12 = vpop.eup %1745 }
 0x78f   : > { %v1313_v14 = vmul.f32 %v1746_v12, %v1742_v63 }
 0x791   : > { %v1314_v15 = vpack.c.bf16 %v1313_v14, %v1312_v13 }
 0x793   : > { %v1324_v16 = vsel %vm864_vm2, %v1314_v15, 0 }
 0x794   : > { %1333 = vmatpush.bf16.xpose.msra.mxu3 %v1324_v16 }
 0x79b   : > { %1659 = vmatmul.msk.bf16.vlgmr.msra.gmra.mxu3 %vm864_vm2, %v1319_v5  ;;  %v1395_v5 = vld [vmem:[%s2222_s7 + $0x18] sm:$0xff] }
 0x79c   : > { %1413 = vperm.xlu0 %1714, %v1395_v5  }
 0x79f   : > { %1712 = vset.pattern.permute.xlu2 %v1755_v24 }
 0x7b6   : > { %1398 = vperm.xlu2 %1712, %v1392_v1  }
 0x7de   : > { %v1210_v22 = vpop.trf.xlu2 }
 0x7df   : > { %1656 = vmatmul.msk.bf16.vlgmr.msra.gmra.mxu2 %vm846_vm1, %v1210_v22 }
 0x7ee   : > { %v1211_v19 = vpop.trf.xlu2 }
 0x7ef   : > { %1657 = vmatmul.msk.bf16.gmra.mxu2 %vm846_vm1, %v1211_v19 }
 0x80e   : > { %v1414_v51 = vpop.permute.xlu0 %1413 }
 0x810   : > { %v1399_v47 = vpop.permute.xlu2 %1398 }
 0x81e   : > { %v1335_v4 = vpop.f32.mrf.mxu3 }
 0x826   : > { %v1337_v25 = vpop.f32.mrf.mxu3 }
 0x827   : > { %v1340_v55 = vpack.c.bf16 %v1337_v25, %v1335_v4 }
 0x829   : > { %1376 = vmatpush.bf16.msrb.mxu2 %v1340_v55 }
 0x82c   : > { %1664 = vmatmul.msk.bf16.vlgmr.msrb.gmra.mxu2 %vm846_vm1, %v1355_v56 }
 0x83c   : > { %1665 = vmatmul.msk.bf16.gmra.mxu2 %vm846_vm1, %v1356_v59 }
 0x862   : > { %v1233_v27 = vpop.f32.mrf.mxu2 }
 0x863   : > { %v1243_v9 = vadd.f32 %v1233_v27, %v1093_v29 }
 0x86a   : > { %v1235_v28 = vpop.f32.mrf.mxu2 }
 0x86b   : > { %v1244_v34 = vadd.f32 %v1235_v28, %v1095_v33 }
 0x872   : > { %v1238_v57 = vpop.f32.mrf.mxu2 }
 0x873   : > { %v1245_v41 = vadd.f32 %v1238_v57, %v1098_v3 }
 0x87a   : > { %v1240_v8 = vpop.f32.mrf.mxu2 }
 0x87b   : > { %v1246_v46 = vadd.f32 %v1240_v8, %v1100_v18 }
 0x8af   : > { %v1378_v10 = vpop.f32.mrf.mxu2 }
 0x8b0   : > { %v1388_v30 = vadd.f32 %v1378_v10, %v1243_v9 }
 0x8b2   : > { %v1416_v31 = vadd.f32 %v1399_v47, %v1388_v30 }
 0x8b4   : > { %1420 = vst.msk [vmem:[%s325_s9] sm:$0xff] %vm846_vm1, %v1416_v31 }
 0x8b7   : > { %v1380_v35 = vpop.f32.mrf.mxu2 }
 0x8b8   : > { %v1389_v38 = vadd.f32 %v1380_v35, %v1244_v34 }
 0x8ba   : > { %v1417_v17 = vadd.f32 %v1404_v36, %v1389_v38 }
 0x8bc   : > { %1421 = vst.msk [vmem:[%s325_s9 + $0x8] sm:$0xff] %vm846_vm1, %v1417_v17 }
 0x8bf   : > { %v1383_v43 = vpop.f32.mrf.mxu2 }
 0x8c0   : > { %v1390_v39 = vadd.f32 %v1383_v43, %v1245_v41 }
 0x8c2   : > { %v1418_v40 = vadd.f32 %v1409_v37, %v1390_v39 }
 0x8c4   : > { %1422 = vst.msk [vmem:[%s325_s9 + $0x10] sm:$0xff] %vm846_vm1, %v1418_v40 }
 0x8c7   : > { %v1385_v50 = vpop.f32.mrf.mxu2 }
 0x8c8   : > { %v1391_v20 = vadd.f32 %v1385_v50, %v1246_v46 }
 0x8ca   : > { %v1419_v44 = vadd.f32 %v1414_v51, %v1391_v20 }
 0x8cc   : > { %1423 = vst.msk [vmem:[%s325_s9 + $0x18] sm:$0xff] %vm846_vm1, %v1419_v44 }
 0x8cd PF: > { %s18_s27 = sadd.s32 1, %s1753_s27  }
 0x8ce   : > { %p15_p4 = scmp.ge.s32.totalorder %s18_s27, 4  }
 0x8d0   :  { %17 = sbr.rel (!%p15_p4) target bundleno = 1 (0x1), region = 89 }

</bundles_post_ra>
